<compile_context>
chip_gen: v5e
topology: v5e:2x2
jax: 0.10.0
libtpu: 0.0.40
codegen_flags: <defaults>
</compile_context>

<pallas_src>
import functools

import jax
import jax.numpy as jnp
from jax.experimental import pallas as pl
from jax.experimental.pallas import tpu as pltpu  # noqa: F401  (TPU backend assumed)

_BN_EPS = 1e-5
_NEG = -1e30          # "-inf" fill for masked max pooling (f32 kernel)
_MM_DTYPE = jnp.bfloat16   # MXU operand dtype (f32 accumulation). jnp.float32 for bit-exact.

_VEC_ORDER = ("c1_b1", "c1_b2", "bn1_g", "bn1_b",
              "c2_b1", "c2_b2", "bn2_g", "bn2_b",
              "c3_b1", "c3_b2", "bn3_g", "bn3_b",
              "fc1_b",
              "dis_b", "dis_g", "dis_beta",
              "mic_b", "mic_g", "mic_beta")


def _round8(n):
    return ((n + 7) // 8) * 8


def _slab_layout(output, dim_dis, dim_mic, feat_in):
    """Row offsets of every parameter block inside the packed [R, output] slab.
    Blocks are 8-row aligned so every in-kernel slice starts on a sublane tile."""
    blocks = (("c1_w1", feat_in), ("c1_w2", output),
              ("c2_w1", output), ("c2_w2", output),
              ("c3_w1", output), ("c3_w2", output),
              ("fc1_w", output),
              ("dm_w", dim_dis + dim_mic),          # [dis_w ; mic_w] block-diag weight
              ("vecs", len(_VEC_ORDER)))            # all [1, output] bias/gamma/beta rows
    offs, off = {}, 0
    for name, rows in blocks:
        offs[name] = (off, rows)
        off += _round8(rows)
    return offs, off


def _full_spec(shape):
    nd = len(shape)
    return pl.BlockSpec(shape, lambda *_: (0,) * nd)


# ----------------------------- in-kernel helpers ------------------------------

def _mm(a, b, dims=(((1,), (0,)), ((), ()))):
    """MXU matmul: bf16 operands, f32 accumulation."""
    return jax.lax.dot_general(a.astype(_MM_DTYPE), b.astype(_MM_DTYPE), dims,
                               preferred_element_type=jnp.float32)


def _batchnorm(z, gamma, beta):
    # PyTorch BatchNorm1d in training mode: biased batch statistics over dim 0.
    # Single-pass stats; gamma*rsqrt(var+eps) folded into one scale vector.
    # TODO(synk): eval-mode running statistics not implemented (training-mode semantics).
    inv_n = 1.0 / z.shape[0]
    mean = jnp.sum(z, axis=0, keepdims=True) * inv_n
    ex2 = jnp.sum(z * z, axis=0, keepdims=True) * inv_n
    scale = gamma * jax.lax.rsqrt(ex2 - mean * mean + _BN_EPS)
    return (z - mean) * scale + beta


def _gin_layer(a, x, w1, b1, w2, b2, gamma, beta):
    # GINConv (eps=0, sum aggregation): h_i = x_i + sum_{j -> i} x_j,
    # MLP (Linear -> ReLU -> Linear), outer ReLU, BatchNorm1d.
    h = x + _mm(a, x)
    z = jnp.maximum(_mm(h, w1) + b1, 0.0)
    z = jnp.maximum(_mm(z, w2) + b2, 0.0)
    return _batchnorm(z, gamma, beta)


# ------------------------------ fused kernel ----------------------------------

def _bio_encoder_kernel(cfg, xdb_ref, edges_ref, p_ref, dmx_ref, out_ref):
    G = cfg["num_graphs"]; n_dis = cfg["n_dis"]; n_mic = cfg["n_mic"]
    F_in = cfg["feat_in"]; offs = cfg["offs"]
    N = xdb_ref.shape[0]          # drug nodes
    E = edges_ref.shape[1]        # edges
    O = out_ref.shape[1]          # output width

    # --- unpack the single parameter slab (static, 8-aligned row slices) -------
    def blk(name):
        lo, rows = offs[name]
        return p_ref[lo:lo + rows, :]
    lo_v, _ = offs["vecs"]
    V = {name: p_ref[lo_v + i:lo_v + i + 1, :] for i, name in enumerate(_VEC_ORDER)}

    # --- dense adjacency built ONCE via transposed one-hot matmul (MXU) --------
    # A[i, j] = #edges j -> i  ==  d_ohT @ s_ohT^T  (contract over edges).
    # bf16 one-hots are exact 0/1; f32 accumulation keeps small counts exact.
    src_row = edges_ref[0:1, :]                                   # [1, E] lane-dense
    dst_row = edges_ref[1:2, :]                                   # [1, E]
    node_iota = jax.lax.broadcasted_iota(jnp.int32, (N, E), 0)
    d_ohT = (dst_row == node_iota).astype(_MM_DTYPE)              # [N, E]
    s_ohT = (src_row == node_iota).astype(_MM_DTYPE)              # [N, E]
    a = jax.lax.dot_general(d_ohT, s_ohT, (((1,), (1,)), ((), ())),
                            preferred_element_type=jnp.float32)   # [N, N]
    # TODO(synk): for very large graphs on v7x (64 MiB VMEM) switch to an E-tiled /
    # A-free aggregation d_ohT @ (s_ohT^T @ x) instead of materializing [N, N].

    x0 = xdb_ref[:, 0:F_in]                                       # drug node features
    batch_col = xdb_ref[:, F_in:F_in + 1]                         # node -> graph id (f32)

    # --- 3 GIN blocks; A and activations stay VMEM/vreg-resident ---------------
    x = _gin_layer(a, x0, blk("c1_w1"), V["c1_b1"], blk("c1_w2"), V["c1_b2"],
                   V["bn1_g"], V["bn1_b"])
    x = _gin_layer(a, x, blk("c2_w1"), V["c2_b1"], blk("c2_w2"), V["c2_b2"],
                   V["bn2_g"], V["bn2_b"])
    x = _gin_layer(a, x, blk("c3_w1"), V["c3_b1"], blk("c3_w2"), V["c3_b2"],
                   V["bn3_g"], V["bn3_b"])

    # --- global max pool: bounded loop, per-graph masked 2-D reduce -------------
    row_ids = jax.lax.broadcasted_iota(jnp.int32, (G, O), 0)

    def pool_body(g, pooled):
        mask = batch_col == g.astype(jnp.float32)                          # [N, 1]
        row = jnp.max(jnp.where(mask, x, _NEG), axis=0, keepdims=True)     # [1, O]
        return jnp.where(row_ids == g, row, pooled)

    pooled = jax.lax.fori_loop(0, G, pool_body,
                               jnp.full((G, O), _NEG, jnp.float32))        # [G, O]

    # --- fc1 + ReLU; nn.Dropout(0.15) is identity at inference ------------------
    # TODO(synk): training-mode stochastic dropout (mask + 1/(1-p) scaling) not implemented.
    drug = jnp.maximum(_mm(pooled, blk("fc1_w")) + V["fc1_b"], 0.0)

    # --- fused disease + microbe branch: one block-diagonal matmul, per-branch BN
    zz = _mm(dmx_ref[...], blk("dm_w"))                                    # [n_dis+n_mic, O]
    z_dis = _batchnorm(jnp.maximum(zz[0:n_dis, :] + V["dis_b"], 0.0),
                       V["dis_g"], V["dis_beta"])
    z_mic = _batchnorm(jnp.maximum(zz[n_dis:n_dis + n_mic, :] + V["mic_b"], 0.0),
                       V["mic_g"], V["mic_beta"])

    # --- single packed, sublane-contiguous output store -------------------------
    out_ref[...] = jnp.concatenate([drug, z_mic, z_dis], axis=0)


# --------------------------- parameters & forward -----------------------------

def _xavier_uniform_t(key, fan_in, fan_out):
    bound = (6.0 / (fan_in + fan_out)) ** 0.5
    # stored pre-transposed: [in, out] so kernels do x @ W^T
    return jax.random.uniform(key, (fan_in, fan_out), jnp.float32, -bound, bound)


def init_params(key, dim_mic, dim_dis, output, feat_in=78):
    ks = jax.random.split(key, 9)
    zb = lambda: jnp.zeros((1, output), jnp.float32)
    og = lambda: jnp.ones((1, output), jnp.float32)
    return {
        "dis_w": _xavier_uniform_t(ks[0], dim_dis, output), "dis_b": zb(),
        "dis_g": og(), "dis_beta": zb(),
        "mic_w": _xavier_uniform_t(ks[1], dim_mic, output), "mic_b": zb(),
        "mic_g": og(), "mic_beta": zb(),
        "c1_w1": _xavier_uniform_t(ks[2], feat_in, output), "c1_b1": zb(),
        "c1_w2": _xavier_uniform_t(ks[3], output, output), "c1_b2": zb(),
        "bn1_g": og(), "bn1_b": zb(),
        "c2_w1": _xavier_uniform_t(ks[4], output, output), "c2_b1": zb(),
        "c2_w2": _xavier_uniform_t(ks[5], output, output), "c2_b2": zb(),
        "bn2_g": og(), "bn2_b": zb(),
        "c3_w1": _xavier_uniform_t(ks[6], output, output), "c3_b1": zb(),
        "c3_w2": _xavier_uniform_t(ks[7], output, output), "c3_b2": zb(),
        "bn3_g": og(), "bn3_b": zb(),
        "fc1_w": _xavier_uniform_t(ks[8], output, output), "fc1_b": zb(),
    }


def pack_params(p):
    """One-time packing of all weights / biases / BN params into one [R, output]
    f32 slab (8-row-aligned blocks).  Amortizes ~30 tiny per-call HBM->VMEM DMAs
    into one sublane-dense copy."""
    output = p["fc1_w"].shape[1]
    dim_dis, dim_mic = p["dis_w"].shape[0], p["mic_w"].shape[0]
    feat_in = p["c1_w1"].shape[0]
    offs, total = _slab_layout(output, dim_dis, dim_mic, feat_in)
    slab = jnp.zeros((total, output), jnp.float32)

    def put(s, name, val):
        lo, rows = offs[name]
        return s.at[lo:lo + rows, :].set(val.astype(jnp.float32))

    for name in ("c1_w1", "c1_w2", "c2_w1", "c2_w2", "c3_w1", "c3_w2", "fc1_w"):
        slab = put(slab, name, p[name])
    slab = put(slab, "dm_w", jnp.concatenate([p["dis_w"], p["mic_w"]], axis=0))
    slab = put(slab, "vecs", jnp.concatenate([p[k] for k in _VEC_ORDER], axis=0))
    return slab


def bio_encoder_forward(pslab, x_d, edge_index, batch, mic_feature, dis_feature, num_graphs):
    n_nodes, feat_in = x_d.shape
    n_dis, dim_dis = dis_feature.shape
    n_mic, dim_mic = mic_feature.shape
    output = pslab.shape[1]

    offs, total = _slab_layout(output, dim_dis, dim_mic, feat_in)
    assert pslab.shape[0] == total, "packed parameter slab does not match input shapes"

    # Glue (cheap XLA layout ops outside the kernel):
    #  * node->graph batch id rides as an extra f32 lane of the node-feature slab,
    #  * src/dst packed into ONE lane-dense [2, E] int32 row array,
    #  * disease/microbe features stacked block-diagonally for one fused matmul.
    xdb = jnp.concatenate(
        [x_d.astype(jnp.float32), batch.astype(jnp.float32).reshape(-1, 1)], axis=1)
    edges = edge_index.astype(jnp.int32).reshape(2, -1)
    dmx = jnp.concatenate([
        jnp.concatenate([dis_feature.astype(jnp.float32),
                         jnp.zeros((n_dis, dim_mic), jnp.float32)], axis=1),
        jnp.concatenate([jnp.zeros((n_mic, dim_dis), jnp.float32),
                         mic_feature.astype(jnp.float32)], axis=1)], axis=0)

    cfg = dict(num_graphs=num_graphs, n_dis=n_dis, n_mic=n_mic,
               feat_in=feat_in, offs=offs)
    total_out = num_graphs + n_mic + n_dis
    out = pl.pallas_call(
        functools.partial(_bio_encoder_kernel, cfg),
        out_shape=jax.ShapeDtypeStruct((total_out, output), jnp.float32),
        in_specs=[_full_spec(xdb.shape), _full_spec(edges.shape),
                  _full_spec(pslab.shape), _full_spec(dmx.shape)],
        out_specs=_full_spec((total_out, output)),
    )(xdb, edges, pslab, dmx)
    # TODO(synk): on v7x (2 TensorCores) a 2-wide "parallel" grid splitting drug vs
    # mic/dis work would use both cores; a single program is fine at these sizes.

    x_drug = out[:num_graphs]
    x_mic = out[num_graphs:num_graphs + n_mic]
    x_dis = out[num_graphs + n_mic:]
    return x_drug, x_mic, x_dis


if __name__ == "__main__":
    key = jax.random.PRNGKey(0)
    dim_mic, dim_dis, output = 24, 16, 32
    # num_features_per_layer / predictor head only feed forward_predictor, not forward()

    n_nodes, num_graphs = 16, 2
    n_mic, n_dis = 8, 8

    kp, kx, km, kd = jax.random.split(key, 4)
    params = init_params(kp, dim_mic, dim_dis, output)
    pslab = pack_params(params)          # one-time parameter packing

    x_d = jax.random.normal(kx, (n_nodes, 78), jnp.float32)
    mic_feature = jax.random.normal(km, (n_mic, dim_mic), jnp.float32)
    dis_feature = jax.random.normal(kd, (n_dis, dim_dis), jnp.float32)

    # two undirected chain graphs of 8 nodes each
    edges = []
    for base in (0, 8):
        for i in range(7):
            edges.append((base + i, base + i + 1))
            edges.append((base + i + 1, base + i))
    edge_index = jnp.array(edges, dtype=jnp.int32).T            # [2, E]
    batch = jnp.array([0] * 8 + [1] * 8, dtype=jnp.int32)       # node -> graph id

    out = bio_encoder_forward(pslab, x_d, edge_index, batch,
                              mic_feature, dis_feature, num_graphs)
    out = jax.tree_util.tree_map(jax.block_until_ready, out)
    x_drug, x_mic, x_dis = out
    assert x_drug.shape == (num_graphs, output)
    assert x_mic.shape == (n_mic, output)
    assert x_dis.shape == (n_dis, output)
    print("KERNEL_OK")
</pallas_src>

<mosaic_0001>
module attributes {stable_mosaic.version = 11 : i64} {
  func.func @_bio_encoder_kernel(%arg0: memref<16x79xf32, #tpu.memory_space<vmem>>, %arg1: memref<2x28xi32, #tpu.memory_space<vmem>>, %arg2: memref<336x32xf32, #tpu.memory_space<vmem>>, %arg3: memref<16x40xf32, #tpu.memory_space<vmem>>, %arg4: memref<18x32xf32, #tpu.memory_space<vmem>>) attributes {dimension_semantics = [], scalar_prefetch = 0 : i64, scratch_operands = 0 : i64, tpu.core_type = #tpu.core_type<tc>} {
    %c312 = arith.constant 312 : index
    %c0 = arith.constant 0 : index
    %0 = vector.load %arg2[%c312, %c0] : memref<336x32xf32, #tpu.memory_space<vmem>>, vector<1x32xf32>
    %c313 = arith.constant 313 : index
    %c0_0 = arith.constant 0 : index
    %1 = vector.load %arg2[%c313, %c0_0] : memref<336x32xf32, #tpu.memory_space<vmem>>, vector<1x32xf32>
    %c314 = arith.constant 314 : index
    %c0_1 = arith.constant 0 : index
    %2 = vector.load %arg2[%c314, %c0_1] : memref<336x32xf32, #tpu.memory_space<vmem>>, vector<1x32xf32>
    %c315 = arith.constant 315 : index
    %c0_2 = arith.constant 0 : index
    %3 = vector.load %arg2[%c315, %c0_2] : memref<336x32xf32, #tpu.memory_space<vmem>>, vector<1x32xf32>
    %c316 = arith.constant 316 : index
    %c0_3 = arith.constant 0 : index
    %4 = vector.load %arg2[%c316, %c0_3] : memref<336x32xf32, #tpu.memory_space<vmem>>, vector<1x32xf32>
    %c317 = arith.constant 317 : index
    %c0_4 = arith.constant 0 : index
    %5 = vector.load %arg2[%c317, %c0_4] : memref<336x32xf32, #tpu.memory_space<vmem>>, vector<1x32xf32>
    %c318 = arith.constant 318 : index
    %c0_5 = arith.constant 0 : index
    %6 = vector.load %arg2[%c318, %c0_5] : memref<336x32xf32, #tpu.memory_space<vmem>>, vector<1x32xf32>
    %c319 = arith.constant 319 : index
    %c0_6 = arith.constant 0 : index
    %7 = vector.load %arg2[%c319, %c0_6] : memref<336x32xf32, #tpu.memory_space<vmem>>, vector<1x32xf32>
    %c320 = arith.constant 320 : index
    %c0_7 = arith.constant 0 : index
    %8 = vector.load %arg2[%c320, %c0_7] : memref<336x32xf32, #tpu.memory_space<vmem>>, vector<1x32xf32>
    %c321 = arith.constant 321 : index
    %c0_8 = arith.constant 0 : index
    %9 = vector.load %arg2[%c321, %c0_8] : memref<336x32xf32, #tpu.memory_space<vmem>>, vector<1x32xf32>
    %c322 = arith.constant 322 : index
    %c0_9 = arith.constant 0 : index
    %10 = vector.load %arg2[%c322, %c0_9] : memref<336x32xf32, #tpu.memory_space<vmem>>, vector<1x32xf32>
    %c323 = arith.constant 323 : index
    %c0_10 = arith.constant 0 : index
    %11 = vector.load %arg2[%c323, %c0_10] : memref<336x32xf32, #tpu.memory_space<vmem>>, vector<1x32xf32>
    %c324 = arith.constant 324 : index
    %c0_11 = arith.constant 0 : index
    %12 = vector.load %arg2[%c324, %c0_11] : memref<336x32xf32, #tpu.memory_space<vmem>>, vector<1x32xf32>
    %c325 = arith.constant 325 : index
    %c0_12 = arith.constant 0 : index
    %13 = vector.load %arg2[%c325, %c0_12] : memref<336x32xf32, #tpu.memory_space<vmem>>, vector<1x32xf32>
    %c326 = arith.constant 326 : index
    %c0_13 = arith.constant 0 : index
    %14 = vector.load %arg2[%c326, %c0_13] : memref<336x32xf32, #tpu.memory_space<vmem>>, vector<1x32xf32>
    %c327 = arith.constant 327 : index
    %c0_14 = arith.constant 0 : index
    %15 = vector.load %arg2[%c327, %c0_14] : memref<336x32xf32, #tpu.memory_space<vmem>>, vector<1x32xf32>
    %c328 = arith.constant 328 : index
    %c0_15 = arith.constant 0 : index
    %16 = vector.load %arg2[%c328, %c0_15] : memref<336x32xf32, #tpu.memory_space<vmem>>, vector<1x32xf32>
    %c329 = arith.constant 329 : index
    %c0_16 = arith.constant 0 : index
    %17 = vector.load %arg2[%c329, %c0_16] : memref<336x32xf32, #tpu.memory_space<vmem>>, vector<1x32xf32>
    %c330 = arith.constant 330 : index
    %c0_17 = arith.constant 0 : index
    %18 = vector.load %arg2[%c330, %c0_17] : memref<336x32xf32, #tpu.memory_space<vmem>>, vector<1x32xf32>
    %c0_18 = arith.constant 0 : index
    %c0_19 = arith.constant 0 : index
    %19 = vector.load %arg1[%c0_18, %c0_19] : memref<2x28xi32, #tpu.memory_space<vmem>>, vector<1x28xi32>
    %c1 = arith.constant 1 : index
    %c0_20 = arith.constant 0 : index
    %20 = vector.load %arg1[%c1, %c0_20] : memref<2x28xi32, #tpu.memory_space<vmem>>, vector<1x28xi32>
    %21 = tpu.iota {dimensions = array<i32: 0>} : vector<16x28xi32>
    %22 = vector.broadcast %20 : vector<1x28xi32> to vector<16x28xi32>
    %23 = arith.cmpi eq, %22, %21 : vector<16x28xi32>
    %24 = arith.extui %23 : vector<16x28xi1> to vector<16x28xi32>
    %25 = arith.sitofp %24 : vector<16x28xi32> to vector<16x28xf32>
    %26 = arith.truncf %25 : vector<16x28xf32> to vector<16x28xbf16>
    %27 = vector.broadcast %19 : vector<1x28xi32> to vector<16x28xi32>
    %28 = arith.cmpi eq, %27, %21 : vector<16x28xi32>
    %29 = arith.extui %28 : vector<16x28xi1> to vector<16x28xi32>
    %30 = arith.sitofp %29 : vector<16x28xi32> to vector<16x28xf32>
    %31 = arith.truncf %30 : vector<16x28xf32> to vector<16x28xbf16>
    %cst = arith.constant dense<0.000000e+00> : vector<16x16xf32>
    %32 = tpu.matmul %26, %31, %cst {dimension_numbers = #tpu.dot_dimension_numbers<[1], [1], [0], [0], [0, 0, 1, 0], [], []>} : vector<16x28xbf16>, vector<16x28xbf16>, vector<16x16xf32> -> vector<16x16xf32>
    %c0_21 = arith.constant 0 : index
    %c0_22 = arith.constant 0 : index
    %33 = vector.load %arg0[%c0_21, %c0_22] : memref<16x79xf32, #tpu.memory_space<vmem>>, vector<16x78xf32>
    %c0_23 = arith.constant 0 : index
    %c78 = arith.constant 78 : index
    %34 = vector.load %arg0[%c0_23, %c78] : memref<16x79xf32, #tpu.memory_space<vmem>>, vector<16x1xf32>
    %c0_24 = arith.constant 0 : index
    %c0_25 = arith.constant 0 : index
    %35 = vector.load %arg2[%c0_24, %c0_25] : memref<336x32xf32, #tpu.memory_space<vmem>>, vector<78x32xf32>
    %c80 = arith.constant 80 : index
    %c0_26 = arith.constant 0 : index
    %36 = vector.load %arg2[%c80, %c0_26] : memref<336x32xf32, #tpu.memory_space<vmem>>, vector<32x32xf32>
    %37 = arith.truncf %32 : vector<16x16xf32> to vector<16x16xbf16>
    %38 = arith.truncf %33 : vector<16x78xf32> to vector<16x78xbf16>
    %cst_27 = arith.constant dense<0.000000e+00> : vector<16x78xf32>
    %39 = tpu.matmul %37, %38, %cst_27 {dimension_numbers = #tpu.dot_dimension_numbers<[1], [0], [0], [1], [0, 0, 1, 1], [], []>} : vector<16x16xbf16>, vector<16x78xbf16>, vector<16x78xf32> -> vector<16x78xf32>
    %40 = arith.addf %33, %39 : vector<16x78xf32>
    %41 = arith.truncf %40 : vector<16x78xf32> to vector<16x78xbf16>
    %42 = arith.truncf %35 : vector<78x32xf32> to vector<78x32xbf16>
    %cst_28 = arith.constant dense<0.000000e+00> : vector<16x32xf32>
    %43 = tpu.matmul %41, %42, %cst_28 {dimension_numbers = #tpu.dot_dimension_numbers<[1], [0], [0], [1], [0, 0, 1, 1], [], []>} : vector<16x78xbf16>, vector<78x32xbf16>, vector<16x32xf32> -> vector<16x32xf32>
    %44 = vector.broadcast %0 : vector<1x32xf32> to vector<16x32xf32>
    %45 = arith.addf %43, %44 : vector<16x32xf32>
    %cst_29 = arith.constant 0.000000e+00 : f32
    %46 = vector.broadcast %cst_29 : f32 to vector<16x32xf32>
    %47 = arith.maximumf %45, %46 : vector<16x32xf32>
    %48 = arith.truncf %47 : vector<16x32xf32> to vector<16x32xbf16>
    %49 = arith.truncf %36 : vector<32x32xf32> to vector<32x32xbf16>
    %cst_30 = arith.constant dense<0.000000e+00> : vector<16x32xf32>
    %50 = tpu.matmul %48, %49, %cst_30 {dimension_numbers = #tpu.dot_dimension_numbers<[1], [0], [0], [1], [0, 0, 1, 1], [], []>} : vector<16x32xbf16>, vector<32x32xbf16>, vector<16x32xf32> -> vector<16x32xf32>
    %51 = vector.broadcast %1 : vector<1x32xf32> to vector<16x32xf32>
    %52 = arith.addf %50, %51 : vector<16x32xf32>
    %cst_31 = arith.constant 0.000000e+00 : f32
    %53 = vector.broadcast %cst_31 : f32 to vector<16x32xf32>
    %54 = arith.maximumf %52, %53 : vector<16x32xf32>
    %cst_32 = arith.constant dense<0.000000e+00> : vector<32xf32>
    %55 = vector.multi_reduction <add>, %54, %cst_32 [0] : vector<16x32xf32> to vector<32xf32>
    %56 = vector.shape_cast %55 : vector<32xf32> to vector<1x32xf32>
    %cst_33 = arith.constant 6.250000e-02 : f32
    %57 = vector.broadcast %cst_33 : f32 to vector<1x32xf32>
    %58 = arith.mulf %56, %57 : vector<1x32xf32>
    %59 = arith.mulf %54, %54 : vector<16x32xf32>
    %cst_34 = arith.constant dense<0.000000e+00> : vector<32xf32>
    %60 = vector.multi_reduction <add>, %59, %cst_34 [0] : vector<16x32xf32> to vector<32xf32>
    %61 = vector.shape_cast %60 : vector<32xf32> to vector<1x32xf32>
    %cst_35 = arith.constant 6.250000e-02 : f32
    %62 = vector.broadcast %cst_35 : f32 to vector<1x32xf32>
    %63 = arith.mulf %61, %62 : vector<1x32xf32>
    %64 = arith.mulf %58, %58 : vector<1x32xf32>
    %65 = arith.subf %63, %64 : vector<1x32xf32>
    %cst_36 = arith.constant 9.99999974E-6 : f32
    %66 = vector.broadcast %cst_36 : f32 to vector<1x32xf32>
    %67 = arith.addf %65, %66 : vector<1x32xf32>
    %68 = math.rsqrt %67 : vector<1x32xf32>
    %69 = arith.mulf %2, %68 : vector<1x32xf32>
    %70 = vector.broadcast %58 : vector<1x32xf32> to vector<16x32xf32>
    %71 = arith.subf %54, %70 : vector<16x32xf32>
    %72 = vector.broadcast %69 : vector<1x32xf32> to vector<16x32xf32>
    %73 = arith.mulf %71, %72 : vector<16x32xf32>
    %74 = vector.broadcast %3 : vector<1x32xf32> to vector<16x32xf32>
    %75 = arith.addf %73, %74 : vector<16x32xf32>
    %c112 = arith.constant 112 : index
    %c0_37 = arith.constant 0 : index
    %76 = vector.load %arg2[%c112, %c0_37] : memref<336x32xf32, #tpu.memory_space<vmem>>, vector<32x32xf32>
    %c144 = arith.constant 144 : index
    %c0_38 = arith.constant 0 : index
    %77 = vector.load %arg2[%c144, %c0_38] : memref<336x32xf32, #tpu.memory_space<vmem>>, vector<32x32xf32>
    %78 = arith.truncf %32 : vector<16x16xf32> to vector<16x16xbf16>
    %79 = arith.truncf %75 : vector<16x32xf32> to vector<16x32xbf16>
    %cst_39 = arith.constant dense<0.000000e+00> : vector<16x32xf32>
    %80 = tpu.matmul %78, %79, %cst_39 {dimension_numbers = #tpu.dot_dimension_numbers<[1], [0], [0], [1], [0, 0, 1, 1], [], []>} : vector<16x16xbf16>, vector<16x32xbf16>, vector<16x32xf32> -> vector<16x32xf32>
    %81 = arith.addf %75, %80 : vector<16x32xf32>
    %82 = arith.truncf %81 : vector<16x32xf32> to vector<16x32xbf16>
    %83 = arith.truncf %76 : vector<32x32xf32> to vector<32x32xbf16>
    %cst_40 = arith.constant dense<0.000000e+00> : vector<16x32xf32>
    %84 = tpu.matmul %82, %83, %cst_40 {dimension_numbers = #tpu.dot_dimension_numbers<[1], [0], [0], [1], [0, 0, 1, 1], [], []>} : vector<16x32xbf16>, vector<32x32xbf16>, vector<16x32xf32> -> vector<16x32xf32>
    %85 = vector.broadcast %4 : vector<1x32xf32> to vector<16x32xf32>
    %86 = arith.addf %84, %85 : vector<16x32xf32>
    %cst_41 = arith.constant 0.000000e+00 : f32
    %87 = vector.broadcast %cst_41 : f32 to vector<16x32xf32>
    %88 = arith.maximumf %86, %87 : vector<16x32xf32>
    %89 = arith.truncf %88 : vector<16x32xf32> to vector<16x32xbf16>
    %90 = arith.truncf %77 : vector<32x32xf32> to vector<32x32xbf16>
    %cst_42 = arith.constant dense<0.000000e+00> : vector<16x32xf32>
    %91 = tpu.matmul %89, %90, %cst_42 {dimension_numbers = #tpu.dot_dimension_numbers<[1], [0], [0], [1], [0, 0, 1, 1], [], []>} : vector<16x32xbf16>, vector<32x32xbf16>, vector<16x32xf32> -> vector<16x32xf32>
    %92 = vector.broadcast %5 : vector<1x32xf32> to vector<16x32xf32>
    %93 = arith.addf %91, %92 : vector<16x32xf32>
    %cst_43 = arith.constant 0.000000e+00 : f32
    %94 = vector.broadcast %cst_43 : f32 to vector<16x32xf32>
    %95 = arith.maximumf %93, %94 : vector<16x32xf32>
    %cst_44 = arith.constant dense<0.000000e+00> : vector<32xf32>
    %96 = vector.multi_reduction <add>, %95, %cst_44 [0] : vector<16x32xf32> to vector<32xf32>
    %97 = vector.shape_cast %96 : vector<32xf32> to vector<1x32xf32>
    %cst_45 = arith.constant 6.250000e-02 : f32
    %98 = vector.broadcast %cst_45 : f32 to vector<1x32xf32>
    %99 = arith.mulf %97, %98 : vector<1x32xf32>
    %100 = arith.mulf %95, %95 : vector<16x32xf32>
    %cst_46 = arith.constant dense<0.000000e+00> : vector<32xf32>
    %101 = vector.multi_reduction <add>, %100, %cst_46 [0] : vector<16x32xf32> to vector<32xf32>
    %102 = vector.shape_cast %101 : vector<32xf32> to vector<1x32xf32>
    %cst_47 = arith.constant 6.250000e-02 : f32
    %103 = vector.broadcast %cst_47 : f32 to vector<1x32xf32>
    %104 = arith.mulf %102, %103 : vector<1x32xf32>
    %105 = arith.mulf %99, %99 : vector<1x32xf32>
    %106 = arith.subf %104, %105 : vector<1x32xf32>
    %cst_48 = arith.constant 9.99999974E-6 : f32
    %107 = vector.broadcast %cst_48 : f32 to vector<1x32xf32>
    %108 = arith.addf %106, %107 : vector<1x32xf32>
    %109 = math.rsqrt %108 : vector<1x32xf32>
    %110 = arith.mulf %6, %109 : vector<1x32xf32>
    %111 = vector.broadcast %99 : vector<1x32xf32> to vector<16x32xf32>
    %112 = arith.subf %95, %111 : vector<16x32xf32>
    %113 = vector.broadcast %110 : vector<1x32xf32> to vector<16x32xf32>
    %114 = arith.mulf %112, %113 : vector<16x32xf32>
    %115 = vector.broadcast %7 : vector<1x32xf32> to vector<16x32xf32>
    %116 = arith.addf %114, %115 : vector<16x32xf32>
    %c176 = arith.constant 176 : index
    %c0_49 = arith.constant 0 : index
    %117 = vector.load %arg2[%c176, %c0_49] : memref<336x32xf32, #tpu.memory_space<vmem>>, vector<32x32xf32>
    %c208 = arith.constant 208 : index
    %c0_50 = arith.constant 0 : index
    %118 = vector.load %arg2[%c208, %c0_50] : memref<336x32xf32, #tpu.memory_space<vmem>>, vector<32x32xf32>
    %119 = arith.truncf %32 : vector<16x16xf32> to vector<16x16xbf16>
    %120 = arith.truncf %116 : vector<16x32xf32> to vector<16x32xbf16>
    %cst_51 = arith.constant dense<0.000000e+00> : vector<16x32xf32>
    %121 = tpu.matmul %119, %120, %cst_51 {dimension_numbers = #tpu.dot_dimension_numbers<[1], [0], [0], [1], [0, 0, 1, 1], [], []>} : vector<16x16xbf16>, vector<16x32xbf16>, vector<16x32xf32> -> vector<16x32xf32>
    %122 = arith.addf %116, %121 : vector<16x32xf32>
    %123 = arith.truncf %122 : vector<16x32xf32> to vector<16x32xbf16>
    %124 = arith.truncf %117 : vector<32x32xf32> to vector<32x32xbf16>
    %cst_52 = arith.constant dense<0.000000e+00> : vector<16x32xf32>
    %125 = tpu.matmul %123, %124, %cst_52 {dimension_numbers = #tpu.dot_dimension_numbers<[1], [0], [0], [1], [0, 0, 1, 1], [], []>} : vector<16x32xbf16>, vector<32x32xbf16>, vector<16x32xf32> -> vector<16x32xf32>
    %126 = vector.broadcast %8 : vector<1x32xf32> to vector<16x32xf32>
    %127 = arith.addf %125, %126 : vector<16x32xf32>
    %cst_53 = arith.constant 0.000000e+00 : f32
    %128 = vector.broadcast %cst_53 : f32 to vector<16x32xf32>
    %129 = arith.maximumf %127, %128 : vector<16x32xf32>
    %130 = arith.truncf %129 : vector<16x32xf32> to vector<16x32xbf16>
    %131 = arith.truncf %118 : vector<32x32xf32> to vector<32x32xbf16>
    %cst_54 = arith.constant dense<0.000000e+00> : vector<16x32xf32>
    %132 = tpu.matmul %130, %131, %cst_54 {dimension_numbers = #tpu.dot_dimension_numbers<[1], [0], [0], [1], [0, 0, 1, 1], [], []>} : vector<16x32xbf16>, vector<32x32xbf16>, vector<16x32xf32> -> vector<16x32xf32>
    %133 = vector.broadcast %9 : vector<1x32xf32> to vector<16x32xf32>
    %134 = arith.addf %132, %133 : vector<16x32xf32>
    %cst_55 = arith.constant 0.000000e+00 : f32
    %135 = vector.broadcast %cst_55 : f32 to vector<16x32xf32>
    %136 = arith.maximumf %134, %135 : vector<16x32xf32>
    %cst_56 = arith.constant dense<0.000000e+00> : vector<32xf32>
    %137 = vector.multi_reduction <add>, %136, %cst_56 [0] : vector<16x32xf32> to vector<32xf32>
    %138 = vector.shape_cast %137 : vector<32xf32> to vector<1x32xf32>
    %cst_57 = arith.constant 6.250000e-02 : f32
    %139 = vector.broadcast %cst_57 : f32 to vector<1x32xf32>
    %140 = arith.mulf %138, %139 : vector<1x32xf32>
    %141 = arith.mulf %136, %136 : vector<16x32xf32>
    %cst_58 = arith.constant dense<0.000000e+00> : vector<32xf32>
    %142 = vector.multi_reduction <add>, %141, %cst_58 [0] : vector<16x32xf32> to vector<32xf32>
    %143 = vector.shape_cast %142 : vector<32xf32> to vector<1x32xf32>
    %cst_59 = arith.constant 6.250000e-02 : f32
    %144 = vector.broadcast %cst_59 : f32 to vector<1x32xf32>
    %145 = arith.mulf %143, %144 : vector<1x32xf32>
    %146 = arith.mulf %140, %140 : vector<1x32xf32>
    %147 = arith.subf %145, %146 : vector<1x32xf32>
    %cst_60 = arith.constant 9.99999974E-6 : f32
    %148 = vector.broadcast %cst_60 : f32 to vector<1x32xf32>
    %149 = arith.addf %147, %148 : vector<1x32xf32>
    %150 = math.rsqrt %149 : vector<1x32xf32>
    %151 = arith.mulf %10, %150 : vector<1x32xf32>
    %152 = vector.broadcast %140 : vector<1x32xf32> to vector<16x32xf32>
    %153 = arith.subf %136, %152 : vector<16x32xf32>
    %154 = vector.broadcast %151 : vector<1x32xf32> to vector<16x32xf32>
    %155 = arith.mulf %153, %154 : vector<16x32xf32>
    %156 = vector.broadcast %11 : vector<1x32xf32> to vector<16x32xf32>
    %157 = arith.addf %155, %156 : vector<16x32xf32>
    %158 = tpu.iota {dimensions = array<i32: 0>} : vector<2x32xi32>
    %cst_61 = arith.constant -1.000000e+30 : f32
    %159 = vector.broadcast %cst_61 : f32 to vector<2x32xf32>
    %c0_i32 = arith.constant 0 : i32
    %c2_i32 = arith.constant 2 : i32
    %160 = arith.addi %c0_i32, %c2_i32 : i32
    %c1_i32 = arith.constant 1 : i32
    %161 = scf.for %arg5 = %c0_i32 to %160 step %c1_i32 iter_args(%arg6 = %159) -> (vector<2x32xf32>)  : i32 {
      %229 = arith.sitofp %arg5 : i32 to f32
      %230 = vector.broadcast %229 : f32 to vector<16x1xf32>
      %231 = arith.cmpf oeq, %34, %230 : vector<16x1xf32>
      %cst_84 = arith.constant -1.000000e+30 : f32
      %232 = vector.shape_cast %231 : vector<16x1xi1> to vector<16x1xi1>
      %233 = vector.broadcast %232 : vector<16x1xi1> to vector<16x32xi1>
      %234 = vector.broadcast %cst_84 : f32 to vector<16x32xf32>
      %235 = arith.select %233, %157, %234 : vector<16x32xi1>, vector<16x32xf32>
      %cst_85 = arith.constant dense<0xFF800000> : vector<32xf32>
      %236 = vector.multi_reduction <maximumf>, %235, %cst_85 [0] : vector<16x32xf32> to vector<32xf32>
      %237 = vector.shape_cast %236 : vector<32xf32> to vector<1x32xf32>
      %238 = vector.broadcast %arg5 : i32 to vector<2x32xi32>
      %239 = arith.cmpi eq, %158, %238 : vector<2x32xi32>
      %240 = vector.shape_cast %237 : vector<1x32xf32> to vector<1x32xf32>
      %241 = vector.broadcast %240 : vector<1x32xf32> to vector<2x32xf32>
      %242 = arith.select %239, %241, %arg6 : vector<2x32xi1>, vector<2x32xf32>
      scf.yield %242 : vector<2x32xf32>
    }
    %c2_i32_62 = arith.constant 2 : i32
    %c240 = arith.constant 240 : index
    %c0_63 = arith.constant 0 : index
    %162 = vector.load %arg2[%c240, %c0_63] : memref<336x32xf32, #tpu.memory_space<vmem>>, vector<32x32xf32>
    %163 = arith.truncf %161 : vector<2x32xf32> to vector<2x32xbf16>
    %164 = arith.truncf %162 : vector<32x32xf32> to vector<32x32xbf16>
    %cst_64 = arith.constant dense<0.000000e+00> : vector<2x32xf32>
    %165 = tpu.matmul %163, %164, %cst_64 {dimension_numbers = #tpu.dot_dimension_numbers<[1], [0], [0], [1], [0, 0, 1, 1], [], []>} : vector<2x32xbf16>, vector<32x32xbf16>, vector<2x32xf32> -> vector<2x32xf32>
    %166 = vector.broadcast %12 : vector<1x32xf32> to vector<2x32xf32>
    %167 = arith.addf %165, %166 : vector<2x32xf32>
    %cst_65 = arith.constant 0.000000e+00 : f32
    %168 = vector.broadcast %cst_65 : f32 to vector<2x32xf32>
    %169 = arith.maximumf %167, %168 : vector<2x32xf32>
    %c0_66 = arith.constant 0 : index
    %c0_67 = arith.constant 0 : index
    %170 = vector.load %arg3[%c0_66, %c0_67] : memref<16x40xf32, #tpu.memory_space<vmem>>, vector<16x40xf32>
    %c272 = arith.constant 272 : index
    %c0_68 = arith.constant 0 : index
    %171 = vector.load %arg2[%c272, %c0_68] : memref<336x32xf32, #tpu.memory_space<vmem>>, vector<40x32xf32>
    %172 = arith.truncf %170 : vector<16x40xf32> to vector<16x40xbf16>
    %173 = arith.truncf %171 : vector<40x32xf32> to vector<40x32xbf16>
    %cst_69 = arith.constant dense<0.000000e+00> : vector<16x32xf32>
    %174 = tpu.matmul %172, %173, %cst_69 {dimension_numbers = #tpu.dot_dimension_numbers<[1], [0], [0], [1], [0, 0, 1, 1], [], []>} : vector<16x40xbf16>, vector<40x32xbf16>, vector<16x32xf32> -> vector<16x32xf32>
    %175 = vector.extract_strided_slice %174 {offsets = [0, 0], sizes = [8, 32], strides = [1, 1]} : vector<16x32xf32> to vector<8x32xf32>
    %176 = vector.broadcast %13 : vector<1x32xf32> to vector<8x32xf32>
    %177 = arith.addf %175, %176 : vector<8x32xf32>
    %cst_70 = arith.constant 0.000000e+00 : f32
    %178 = vector.broadcast %cst_70 : f32 to vector<8x32xf32>
    %179 = arith.maximumf %177, %178 : vector<8x32xf32>
    %cst_71 = arith.constant dense<0.000000e+00> : vector<32xf32>
    %180 = vector.multi_reduction <add>, %179, %cst_71 [0] : vector<8x32xf32> to vector<32xf32>
    %181 = vector.shape_cast %180 : vector<32xf32> to vector<1x32xf32>
    %cst_72 = arith.constant 1.250000e-01 : f32
    %182 = vector.broadcast %cst_72 : f32 to vector<1x32xf32>
    %183 = arith.mulf %181, %182 : vector<1x32xf32>
    %184 = arith.mulf %179, %179 : vector<8x32xf32>
    %cst_73 = arith.constant dense<0.000000e+00> : vector<32xf32>
    %185 = vector.multi_reduction <add>, %184, %cst_73 [0] : vector<8x32xf32> to vector<32xf32>
    %186 = vector.shape_cast %185 : vector<32xf32> to vector<1x32xf32>
    %cst_74 = arith.constant 1.250000e-01 : f32
    %187 = vector.broadcast %cst_74 : f32 to vector<1x32xf32>
    %188 = arith.mulf %186, %187 : vector<1x32xf32>
    %189 = arith.mulf %183, %183 : vector<1x32xf32>
    %190 = arith.subf %188, %189 : vector<1x32xf32>
    %cst_75 = arith.constant 9.99999974E-6 : f32
    %191 = vector.broadcast %cst_75 : f32 to vector<1x32xf32>
    %192 = arith.addf %190, %191 : vector<1x32xf32>
    %193 = math.rsqrt %192 : vector<1x32xf32>
    %194 = arith.mulf %14, %193 : vector<1x32xf32>
    %195 = vector.broadcast %183 : vector<1x32xf32> to vector<8x32xf32>
    %196 = arith.subf %179, %195 : vector<8x32xf32>
    %197 = vector.broadcast %194 : vector<1x32xf32> to vector<8x32xf32>
    %198 = arith.mulf %196, %197 : vector<8x32xf32>
    %199 = vector.broadcast %15 : vector<1x32xf32> to vector<8x32xf32>
    %200 = arith.addf %198, %199 : vector<8x32xf32>
    %201 = vector.extract_strided_slice %174 {offsets = [8, 0], sizes = [8, 32], strides = [1, 1]} : vector<16x32xf32> to vector<8x32xf32>
    %202 = vector.broadcast %16 : vector<1x32xf32> to vector<8x32xf32>
    %203 = arith.addf %201, %202 : vector<8x32xf32>
    %cst_76 = arith.constant 0.000000e+00 : f32
    %204 = vector.broadcast %cst_76 : f32 to vector<8x32xf32>
    %205 = arith.maximumf %203, %204 : vector<8x32xf32>
    %cst_77 = arith.constant dense<0.000000e+00> : vector<32xf32>
    %206 = vector.multi_reduction <add>, %205, %cst_77 [0] : vector<8x32xf32> to vector<32xf32>
    %207 = vector.shape_cast %206 : vector<32xf32> to vector<1x32xf32>
    %cst_78 = arith.constant 1.250000e-01 : f32
    %208 = vector.broadcast %cst_78 : f32 to vector<1x32xf32>
    %209 = arith.mulf %207, %208 : vector<1x32xf32>
    %210 = arith.mulf %205, %205 : vector<8x32xf32>
    %cst_79 = arith.constant dense<0.000000e+00> : vector<32xf32>
    %211 = vector.multi_reduction <add>, %210, %cst_79 [0] : vector<8x32xf32> to vector<32xf32>
    %212 = vector.shape_cast %211 : vector<32xf32> to vector<1x32xf32>
    %cst_80 = arith.constant 1.250000e-01 : f32
    %213 = vector.broadcast %cst_80 : f32 to vector<1x32xf32>
    %214 = arith.mulf %212, %213 : vector<1x32xf32>
    %215 = arith.mulf %209, %209 : vector<1x32xf32>
    %216 = arith.subf %214, %215 : vector<1x32xf32>
    %cst_81 = arith.constant 9.99999974E-6 : f32
    %217 = vector.broadcast %cst_81 : f32 to vector<1x32xf32>
    %218 = arith.addf %216, %217 : vector<1x32xf32>
    %219 = math.rsqrt %218 : vector<1x32xf32>
    %220 = arith.mulf %17, %219 : vector<1x32xf32>
    %221 = vector.broadcast %209 : vector<1x32xf32> to vector<8x32xf32>
    %222 = arith.subf %205, %221 : vector<8x32xf32>
    %223 = vector.broadcast %220 : vector<1x32xf32> to vector<8x32xf32>
    %224 = arith.mulf %222, %223 : vector<8x32xf32>
    %225 = vector.broadcast %18 : vector<1x32xf32> to vector<8x32xf32>
    %226 = arith.addf %224, %225 : vector<8x32xf32>
    %227 = tpu.concatenate %169, %226, %200 in 0 : vector<2x32xf32>, vector<8x32xf32>, vector<8x32xf32> -> vector<18x32xf32>
    %c0_82 = arith.constant 0 : index
    %c0_83 = arith.constant 0 : index
    %228 = vector.load %arg4[%c0_82, %c0_83] : memref<18x32xf32, #tpu.memory_space<vmem>>, vector<18x32xf32>
    tpu.vector_store %arg4[%c0_82, %c0_83], %227 {strides = array<i32>} : memref<18x32xf32, #tpu.memory_space<vmem>>, vector<18x32xf32>,
    return
  }
}

</mosaic_0001>

<bundles_post_ra>
// kernel: tpu_custom_call.1
= control target key start
LH: loop header
LB: loop body
LE: loop exit
PB: predicated region body
PF: predicated region fallthrough
CT: control target
= control target key end

     0   :  { %9 = vsyncpa [#allocation3], 0  ;;  %v40_v2 = vlaneseq  ;;  %v759_v12 = vmov 0.0   ;;  %vm59_vm2 = vcmask 228352   ;;  %vm129_vm5 = vcmask 1046528   ;;  %s1001_s10 = smov 0   ;;  %s1078_s0 = inlined_call_operand.vmem [shape: f32[16,79], index: 0, kind: input, shape index: {}]   ;;  %s1079_s1 = inlined_call_operand.vmem [shape: s32[2,28], index: 1, kind: input, shape index: {}]   ;;  %s1080_s2 = inlined_call_operand.vmem [shape: f32[336,32], index: 2, kind: input, shape index: {}]   ;;  %s1081_s3 = inlined_call_operand.vmem [shape: f32[16,40], index: 3, kind: input, shape index: {}]   ;;  %s1082_s4 = inlined_call_operand.hbm [shape: f32[18,32], index: 4, kind: output, shape index: {}]  }
   0x1   :  { %v793_v0 = vld [vmem:[%s1080_s2 + $0x144] sm:$0x1]  ;;  %v798_v1 = vld [vmem:[%s1080_s2 + $0x145] sm:$0x1]  ;;  %v803_v3 = vld [vmem:[%s1080_s2 + $0x146] sm:$0x1] }
   0x2   :  { %v808_v4 = vld [vmem:[%s1080_s2 + $0x147] sm:$0x1]  ;;  %v813_v5 = vld [vmem:[%s1080_s2 + $0x148] sm:$0x1]  ;;  %v818_v6 = vld [vmem:[%s1080_s2 + $0x149] sm:$0x1] }
   0x3   :  { %v823_v7 = vld [vmem:[%s1080_s2 + $0x14a] sm:$0x1]  ;;  %v825_v8 = vshrl.u32 %v40_v2, 7  ;;  %v695_v9 = vld [vmem:[%s1079_s1] ss:$0 sm:$0xff]  ;;  %v88_v26 = vld [vmem:[%s1080_s2 + $0x30] sm:$0xff] }
   0x4   :  { %v696_v10 = vld [vmem:[%s1079_s1 + $0x1] ss:$0 sm:$0xff]  ;;  %v844_v21 = vld [vmem:[%s1078_s0 + $0x8] sm:$0xff]  ;;  %v89_v27 = vld [vmem:[%s1080_s2 + $0x38] sm:$0xff]  ;;  %vm98_vm6 = vcmask 130048   ;;  %vm125_vm7 = vcmask 637952  }
   0x5   :  { %v42_v11 = vadd.s32 8, %v825_v8  ;;  %vm52_vm0 = vcmp.eq.s32.totalorder %v695_v9, %v825_v8  ;;  %vm44_vm3 = vcmp.eq.s32.totalorder %v696_v10, %v825_v8  ;;  %v839_v20 = vld [vmem:[%s1078_s0] sm:$0xff]  ;;  %v91_v24 = vld [vmem:[%s1080_s2 + $0x48] sm:$0x3f]  ;;  %v122_v29 = vpack.c.bf16 %v89_v27, %v88_v26  ;;  %v84_v36 = vld [vmem:[%s1080_s2 + $0x10] sm:$0xff] }
   0x6   :  { %v659_v13 = vsel %vm52_vm0, 1.0, %v759_v12  ;;  %v657_v17 = vsel %vm44_vm3, 1.0, %v759_v12  ;;  %v97_v22 = vpack.c.bf16 %v844_v21, %v839_v20  ;;  %v90_v23 = vld [vmem:[%s1080_s2 + $0x40] sm:$0xff]  ;;  %v87_v34 = vld [vmem:[%s1080_s2 + $0x28] sm:$0xff]  ;;  %v85_v37 = vld [vmem:[%s1080_s2 + $0x18] sm:$0xff]  ;;  %vm153_vm8 = vcmask 261120  }
   0x7   :  { %vm53_vm1 = vcmp.eq.s32.totalorder %v695_v9, %v42_v11  ;;  %vm45_vm4 = vcmp.eq.s32.totalorder %v696_v10, %v42_v11  ;;  %v123_v25 = vpack.c.bf16 %v91_v24, %v90_v23  ;;  %v86_v33 = vld [vmem:[%s1080_s2 + $0x20] sm:$0xff]  ;;  %v120_v38 = vpack.c.bf16 %v85_v37, %v84_v36  ;;  %v83_v40 = vld [vmem:[%s1080_s2 + $0x8] sm:$0xff]  ;;  %v92_v50 = vld [vmem:[%s1080_s2 + $0x50] sm:$0xff] }
   0x8   :  { %v660_v14 = vsel %vm53_vm1, 1.0, %v759_v12  ;;  %v658_v18 = vsel %vm45_vm4, 1.0, %v759_v12  ;;  %109 = vmatpush.bf16.msra.mxu2 %v97_v22  ;;  %v121_v35 = vpack.c.bf16 %v87_v34, %v86_v33  ;;  %v82_v39 = vld [vmem:[%s1080_s2] sm:$0xff]  ;;  %v95_v48 = vld [vmem:[%s1080_s2 + $0x68] sm:$0xff]  ;;  %v93_v51 = vld [vmem:[%s1080_s2 + $0x58] sm:$0xff] }
   0x9   :  { %v58_v15 = vpack.c.bf16 %v660_v14, %v659_v13  ;;  %v50_v19 = vpack.c.bf16 %v658_v18, %v657_v17  ;;  %v131_v28 = vsel %vm129_vm5, %v123_v25, 0  ;;  %v119_v41 = vpack.c.bf16 %v83_v40, %v82_v39  ;;  %v94_v47 = vld [vmem:[%s1080_s2 + $0x60] sm:$0xff]  ;;  %v697_v54 = vld [vmem:[%s1080_s2 + $0x138] ss:$0 sm:$0xff]  ;;  %v698_v61 = vld [vmem:[%s1080_s2 + $0x139] ss:$0 sm:$0xff] }
   0xa   :  { %v151_v49 = vpack.c.bf16 %v95_v48, %v94_v47  ;;  %v150_v52 = vpack.c.bf16 %v93_v51, %v92_v50 }
   0xb   :  { %v64_v16 = vsel %vm59_vm2, %v58_v15, 0 }
   0xc   :  { %73 = vmatpush.bf16.xpose.msra.mxu0 %v64_v16  ;;  %136 = vmatpush.bf16.msrb.mxu2 %v131_v28 }
   0xd   :  { %163 = vmatpush.bf16.msra.mxu3 %v151_v49 }
  0x10   :  { %137 = vmatpush.bf16.msrb.mxu2 %v122_v29 }
  0x11   :  { %164 = vmatpush.bf16.msra.mxu3 %v150_v52  ;;  %v699_v52 = vld [vmem:[%s1080_s2 + $0x13b] ss:$0 sm:$0xff] }
  0x13   :  { %661 = vmatmul.msk.bf16.vlgmr.msra.gmra.mxu0 %vm59_vm2, %v50_v19 }
  0x14   :  { %138 = vmatpush.bf16.msrb.mxu2 %v121_v35 }
  0x18   :  { %139 = vmatpush.bf16.msrb.mxu2 %v120_v38 }
  0x1c   :  { %140 = vmatpush.bf16.msrb.mxu2 %v119_v41 }
  0x90   :  { %v75_v30 = vpop.f32.mrf.mxu0 }
  0x98   :  { %v77_v31 = vpop.f32.mrf.mxu0 }
  0x99   :  { %v860_v32 = vpack.c.bf16 %v77_v31, %v75_v30 }
  0x9b   :  { %662 = vmatmul.msk.bf16.vlgmr.msra.gmra.mxu2 %vm98_vm6, %v860_v32 }
 0x11e   :  { %v111_v42 = vpop.f32.mrf.mxu2 }
 0x11f   :  { %v116_v44 = vadd.f32 %v111_v42, %v839_v20 }
 0x126   :  { %v113_v43 = vpop.f32.mrf.mxu2 }
 0x127   :  { %v117_v45 = vadd.f32 %v113_v43, %v844_v21 }
 0x129   :  { %v118_v46 = vpack.c.bf16 %v117_v45, %v116_v44  ;;  %v21_v45 = vld [vmem:[%s1080_s2 + $0x13a] sm:$0x1] }
 0x12b   :  { %663 = vmatmul.msk.bf16.vlgmr.msrb.gmra.mxu2 %vm125_vm7, %v118_v46 }
 0x1ae   :  { %v142_v53 = vpop.f32.mrf.mxu2 }
 0x1af   :  { %v143_v55 = vadd.f32 %v697_v54, %v142_v53 }
 0x1b1   :  { %v147_v58 = vmax.f32 %v143_v55, 0.0 }
 0x1b6   :  { %v144_v56 = vpop.f32.mrf.mxu2 }
 0x1b7   :  { %v145_v57 = vadd.f32 %v697_v54, %v144_v56 }
 0x1b9   :  { %v148_v59 = vmax.f32 %v145_v57, 0.0 }
 0x1bb   :  { %v149_v60 = vpack.c.bf16 %v148_v59, %v147_v58  ;;  %v219_v58 = vld [vmem:[%s1080_s2 + $0x80] sm:$0xff]  ;;  %v220_v59 = vld [vmem:[%s1080_s2 + $0x88] sm:$0xff] }
 0x1bd   :  { %664 = vmatmul.msk.bf16.vlgmr.msra.gmra.mxu3 %vm153_vm8, %v149_v60  ;;  %v244_v60 = vpack.c.bf16 %v220_v59, %v219_v58 }
 0x1bf   :  { %255 = vmatpush.bf16.msrb.mxu0 %v244_v60 }
 0x240   :  { %v166_v62 = vpop.f32.mrf.mxu3 }
 0x241   :  { %v167_v63 = vadd.f32 %v698_v61, %v166_v62  ;;  %v218_v62 = vld [vmem:[%s1080_s2 + $0x78] sm:$0xff] }
 0x243   :  { %v171_v2 = vmax.f32 %v167_v63, 0.0 }
 0x245   :  { %v183_v11 = vmul.f32 %v171_v2, %v171_v2  ;;  %v173_v13 = vsel %vm153_vm8, %v171_v2, 0.0 }
 0x247   :  { %v185_v17 = vsel %vm153_vm8, %v183_v11, 0.0 }
 0x248   :  { %v168_v9 = vpop.f32.mrf.mxu3 }
 0x249   :  { %v169_v10 = vadd.f32 %v698_v61, %v168_v9  ;;  %v217_v61 = vld [vmem:[%s1080_s2 + $0x70] sm:$0xff] }
 0x24a   :  { %v243_v63 = vpack.c.bf16 %v218_v62, %v217_v61 }
 0x24b   :  { %v172_v12 = vmax.f32 %v169_v10, 0.0 }
 0x24c   :  { %256 = vmatpush.bf16.msrb.mxu0 %v243_v63 }
 0x24d   :  { %v174_v14 = vsel %vm153_vm8, %v172_v12, 0.0  ;;  %v184_v15 = vmul.f32 %v172_v12, %v172_v12 }
 0x24e   :  { %v175_v16 = vadd.f32 %v174_v14, %v173_v13  ;;  %v223_v13 = vld [vmem:[%s1080_s2 + $0xa0] sm:$0xff]  ;;  %v224_v14 = vld [vmem:[%s1080_s2 + $0xa8] sm:$0xff] }
 0x24f   :  { %v186_v18 = vsel %vm153_vm8, %v184_v15, 0.0  ;;  %v267_v15 = vpack.c.bf16 %v224_v14, %v223_v13 }
 0x250   :  { %v176_v19 = vrot.slane %v175_v16, 4  ;;  %v187_v22 = vadd.f32 %v186_v18, %v185_v17  ;;  %v222_v17 = vld [vmem:[%s1080_s2 + $0x98] sm:$0xff] }
 0x251   :  { %278 = vmatpush.bf16.msrb.mxu3 %v267_v15 }
 0x252   :  { %v177_v23 = vadd.f32 %v176_v19, %v175_v16  ;;  %v188_v24 = vrot.slane %v187_v22, 4  ;;  %v221_v16 = vld [vmem:[%s1080_s2 + $0x90] sm:$0xff] }
 0x253   :  { %v266_v18 = vpack.c.bf16 %v222_v17, %v221_v16 }
 0x254   :  { %v178_v25 = vrot.slane %v177_v23, 2  ;;  %v189_v26 = vadd.f32 %v188_v24, %v187_v22  ;;  %v700_v22 = vld [vmem:[%s1080_s2 + $0x13c] ss:$0 sm:$0xff] }
 0x255   :  { %279 = vmatpush.bf16.msrb.mxu3 %v266_v18  ;;  %v702_v18 = vld [vmem:[%s1080_s2 + $0x13f] ss:$0 sm:$0xff] }
 0x256   :  { %v179_v27 = vadd.f32 %v178_v25, %v177_v23  ;;  %v190_v28 = vrot.slane %v189_v26, 2 }
 0x258   :  { %v180_v29 = vrot.slane %v179_v27, 1  ;;  %v191_v30 = vadd.f32 %v190_v28, %v189_v26 }
 0x25a   :  { %v181_v31 = vadd.f32 %v180_v29, %v179_v27  ;;  %v192_v33 = vrot.slane %v191_v30, 1  ;;  %v701_v29 = vld [vmem:[%s1080_s2 + $0x13d] ss:$0 sm:$0xff] }
 0x25c   :  { %v182_v34 = vmul.f32 0.0625, %v181_v31  ;;  %v193_v35 = vadd.f32 %v192_v33, %v191_v30 }
 0x25e   :  { %v194_v36 = vmul.f32 0.0625, %v193_v35  ;;  %v195_v37 = vmul.f32 %v182_v34, %v182_v34  ;;  %v210_v49 = vsub.f32 %v172_v12, %v182_v34  ;;  %v209_v50 = vsub.f32 %v171_v2, %v182_v34 }
 0x260   :  { %v196_v38 = vsub.f32 %v194_v36, %v195_v37 }
 0x262   :  { %v197_v39 = vadd.f32 1e-05, %v196_v38 }
 0x264   :  { %706 = vrsqrt.f32 %v197_v39  ;;  %vm204_vm10 = vweird.f32 %v197_v39 }
 0x26a   :  { %v707_v40 = vpop.eup %706 }
 0x26b   :  { %v199_v41 = vmul.f32 %v707_v40, %v197_v39  ;;  %vm205_vm9 = vweird.f32 %v707_v40 }
 0x26c   :  { %vm206_vm11 = vmor %vm204_vm10, %vm205_vm9 }
 0x26d   :  { %v200_v42 = vmul.f32 %v707_v40, %v199_v41 }
 0x26f   :  { %v201_v43 = vmul.f32 0.5, %v200_v42 }
 0x271   :  { %v202_v44 = vsub.f32 1.5, %v201_v43 }
 0x273   :  { %v203_v46 = vmul.f32 %v707_v40, %v202_v44 }
 0x275   :  { %v207_v47 = vsel %vm206_vm11, %v707_v40, %v203_v46 }
 0x276   :  { %v208_v48 = vmul.f32 %v207_v47, %v21_v45 }
 0x278   :  { %v211_v51 = vperm.slane %v208_v48, 0 }
 0x27a   :  { %v212_v53 = vmul.f32 %v211_v51, %v209_v50  ;;  %v213_v54 = vmul.f32 %v211_v51, %v210_v49 }
 0x27c   :  { %v215_v55 = vadd.f32 %v699_v52, %v212_v53  ;;  %v216_v56 = vadd.f32 %v699_v52, %v213_v54 }
 0x27e   :  { %v225_v57 = vpack.c.bf16 %v216_v56, %v215_v55 }
 0x280   :  { %233 = vmatpush.bf16.msra.mxu1 %v225_v57 }
 0x283   :  { %665 = vmatmul.msk.bf16.vlgmr.msra.gmra.mxu1 %vm98_vm6, %v860_v32 }
 0x300   :  { %v235_v2 = vpop.f32.mrf.mxu1 }
 0x301   :  { %v240_v10 = vadd.f32 %v235_v2, %v215_v55 }
 0x308   :  { %v237_v9 = vpop.f32.mrf.mxu1 }
 0x309   :  { %v241_v11 = vadd.f32 %v237_v9, %v216_v56 }
 0x30b   :  { %v242_v12 = vpack.c.bf16 %v241_v11, %v240_v10  ;;  %v25_v11 = vld [vmem:[%s1080_s2 + $0x13e] sm:$0x1] }
 0x30d   :  { %666 = vmatmul.msk.bf16.vlgmr.msrb.gmra.mxu0 %vm153_vm8, %v242_v12 }
 0x38a   :  { %v258_v19 = vpop.f32.mrf.mxu0 }
 0x38b   :  { %v259_v23 = vadd.f32 %v700_v22, %v258_v19 }
 0x38d   :  { %v263_v26 = vmax.f32 %v259_v23, 0.0 }
 0x392   :  { %v260_v24 = vpop.f32.mrf.mxu0 }
 0x393   :  { %v261_v25 = vadd.f32 %v700_v22, %v260_v24 }
 0x395   :  { %v264_v27 = vmax.f32 %v261_v25, 0.0 }
 0x397   :  { %v265_v28 = vpack.c.bf16 %v264_v27, %v263_v26  ;;  %v334_v26 = vld [vmem:[%s1080_s2 + $0xc0] sm:$0xff]  ;;  %v335_v27 = vld [vmem:[%s1080_s2 + $0xc8] sm:$0xff] }
 0x399   :  { %667 = vmatmul.msk.bf16.vlgmr.msrb.gmra.mxu3 %vm153_vm8, %v265_v28  ;;  %v359_v28 = vpack.c.bf16 %v335_v27, %v334_v26 }
 0x39b   :  { %370 = vmatpush.bf16.msra.mxu2 %v359_v28 }
 0x41c   :  { %v281_v30 = vpop.f32.mrf.mxu3 }
 0x41d   :  { %v282_v31 = vadd.f32 %v701_v29, %v281_v30  ;;  %v333_v30 = vld [vmem:[%s1080_s2 + $0xb8] sm:$0xff] }
 0x41f   :  { %v286_v33 = vmax.f32 %v282_v31, 0.0 }
 0x421   :  { %v298_v36 = vmul.f32 %v286_v33, %v286_v33  ;;  %v288_v38 = vsel %vm153_vm8, %v286_v33, 0.0 }
 0x423   :  { %v300_v42 = vsel %vm153_vm8, %v298_v36, 0.0 }
 0x424   :  { %v283_v34 = vpop.f32.mrf.mxu3 }
 0x425   :  { %v284_v35 = vadd.f32 %v701_v29, %v283_v34  ;;  %v332_v29 = vld [vmem:[%s1080_s2 + $0xb0] sm:$0xff] }
 0x426   :  { %v358_v31 = vpack.c.bf16 %v333_v30, %v332_v29 }
 0x427   :  { %v287_v37 = vmax.f32 %v284_v35, 0.0 }
 0x428   :  { %371 = vmatpush.bf16.msra.mxu2 %v358_v31 }
 0x429   :  { %v289_v39 = vsel %vm153_vm8, %v287_v37, 0.0  ;;  %v299_v40 = vmul.f32 %v287_v37, %v287_v37 }
 0x42a   :  { %v290_v41 = vadd.f32 %v289_v39, %v288_v38  ;;  %v339_v38 = vld [vmem:[%s1080_s2 + $0xe8] sm:$0xff] }
 0x42b   :  { %v301_v43 = vsel %vm153_vm8, %v299_v40, 0.0  ;;  %v336_v40 = vld [vmem:[%s1080_s2 + $0xd0] sm:$0xff] }
 0x42c   :  { %v291_v44 = vrot.slane %v290_v41, 4  ;;  %v302_v45 = vadd.f32 %v301_v43, %v300_v42 }
 0x42e   :  { %v292_v46 = vadd.f32 %v291_v44, %v290_v41  ;;  %v303_v47 = vrot.slane %v302_v45, 4  ;;  %v337_v41 = vld [vmem:[%s1080_s2 + $0xd8] sm:$0xff]  ;;  %v703_v44 = vld [vmem:[%s1080_s2 + $0x140] ss:$0 sm:$0xff] }
 0x42f   :  { %v381_v42 = vpack.c.bf16 %v337_v41, %v336_v40  ;;  %v705_v41 = vld [vmem:[%s1080_s2 + $0x143] ss:$0 sm:$0xff] }
 0x430   :  { %v293_v48 = vrot.slane %v292_v46, 2  ;;  %v304_v49 = vadd.f32 %v303_v47, %v302_v45 }
 0x432   :  { %v294_v50 = vadd.f32 %v293_v48, %v292_v46  ;;  %v305_v51 = vrot.slane %v304_v49, 2 }
 0x434   :  { %v295_v52 = vrot.slane %v294_v50, 1  ;;  %v306_v53 = vadd.f32 %v305_v51, %v304_v49  ;;  %v704_v51 = vld [vmem:[%s1080_s2 + $0x141] ss:$0 sm:$0xff] }
 0x436   :  { %v296_v54 = vadd.f32 %v295_v52, %v294_v50  ;;  %v307_v55 = vrot.slane %v306_v53, 1 }
 0x438   :  { %v297_v56 = vmul.f32 0.0625, %v296_v54  ;;  %v308_v57 = vadd.f32 %v307_v55, %v306_v53 }
 0x43a   :  { %v309_v58 = vmul.f32 0.0625, %v308_v57  ;;  %v310_v59 = vmul.f32 %v297_v56, %v297_v56  ;;  %v325_v15 = vsub.f32 %v287_v37, %v297_v56  ;;  %v324_v16 = vsub.f32 %v286_v33, %v297_v56  ;;  %v338_v37 = vld [vmem:[%s1080_s2 + $0xe0] sm:$0xff] }
 0x43b   :  { %v382_v39 = vpack.c.bf16 %v339_v38, %v338_v37 }
 0x43c   :  { %v311_v60 = vsub.f32 %v309_v58, %v310_v59 }
 0x43d   :  { %393 = vmatpush.bf16.msra.mxu0 %v382_v39 }
 0x43e   :  { %v312_v61 = vadd.f32 1e-05, %v311_v60 }
 0x440   :  { %708 = vrsqrt.f32 %v312_v61  ;;  %vm319_vm13 = vweird.f32 %v312_v61 }
 0x441   :  { %394 = vmatpush.bf16.msra.mxu0 %v381_v42 }
 0x446   :  { %v709_v62 = vpop.eup %708 }
 0x447   :  { %v314_v63 = vmul.f32 %v709_v62, %v312_v61  ;;  %vm320_vm12 = vweird.f32 %v709_v62 }
 0x448   :  { %vm321_vm14 = vmor %vm319_vm13, %vm320_vm12 }
 0x449   :  { %v315_v2 = vmul.f32 %v709_v62, %v314_v63 }
 0x44b   :  { %v316_v9 = vmul.f32 0.5, %v315_v2 }
 0x44d   :  { %v317_v10 = vsub.f32 1.5, %v316_v9 }
 0x44f   :  { %v318_v12 = vmul.f32 %v709_v62, %v317_v10 }
 0x451   :  { %v322_v13 = vsel %vm321_vm14, %v709_v62, %v318_v12 }
 0x452   :  { %v323_v14 = vmul.f32 %v322_v13, %v25_v11 }
 0x454   :  { %v326_v17 = vperm.slane %v323_v14, 0 }
 0x456   :  { %v327_v19 = vmul.f32 %v326_v17, %v324_v16  ;;  %v328_v22 = vmul.f32 %v326_v17, %v325_v15 }
 0x458   :  { %v330_v23 = vadd.f32 %v702_v18, %v327_v19  ;;  %v331_v24 = vadd.f32 %v702_v18, %v328_v22 }
 0x45a   :  { %v340_v25 = vpack.c.bf16 %v331_v24, %v330_v23 }
 0x45c   :  { %348 = vmatpush.bf16.msrb.mxu1 %v340_v25 }
 0x45f   :  { %668 = vmatmul.msk.bf16.vlgmr.msrb.gmra.mxu1 %vm98_vm6, %v860_v32 }
 0x4dc   :  { %v350_v32 = vpop.f32.mrf.mxu1 }
 0x4dd   :  { %v355_v34 = vadd.f32 %v350_v32, %v330_v23 }
 0x4e4   :  { %v352_v33 = vpop.f32.mrf.mxu1 }
 0x4e5   :  { %v356_v35 = vadd.f32 %v352_v33, %v331_v24 }
 0x4e7   :  { %v357_v36 = vpack.c.bf16 %v356_v35, %v355_v34  ;;  %v29_v34 = vld [vmem:[%s1080_s2 + $0x142] sm:$0x1] }
 0x4e9   :  { %669 = vmatmul.msk.bf16.vlgmr.msra.gmra.mxu2 %vm153_vm8, %v357_v36 }
 0x56c   :  { %v373_v43 = vpop.f32.mrf.mxu2 }
 0x56d   :  { %v374_v45 = vadd.f32 %v703_v44, %v373_v43 }
 0x56f   :  { %v378_v48 = vmax.f32 %v374_v45, 0.0 }
 0x574   :  { %v375_v46 = vpop.f32.mrf.mxu2 }
 0x575   :  { %v376_v47 = vadd.f32 %v703_v44, %v375_v46  ;;  %v751_v46 = vmov -1e+30  }
 0x577   :  { %v379_v49 = vmax.f32 %v376_v47, 0.0 }
 0x579   :  { %v380_v50 = vpack.c.bf16 %v379_v49, %v378_v48 }
 0x57b   :  { %670 = vmatmul.msk.bf16.vlgmr.msra.gmra.mxu0 %vm153_vm8, %v380_v50 }
 0x5f8   :  { %v396_v52 = vpop.f32.mrf.mxu0 }
 0x5f9   :  { %v397_v53 = vadd.f32 %v704_v51, %v396_v52 }
 0x5fb   :  { %v401_v54 = vmax.f32 %v397_v53, 0.0 }
 0x5fd   :  { %v413_v57 = vmul.f32 %v401_v54, %v401_v54  ;;  %v403_v59 = vsel %vm153_vm8, %v401_v54, 0.0 }
 0x5ff   :  { %v415_v63 = vsel %vm153_vm8, %v413_v57, 0.0 }
 0x600   :  { %v398_v55 = vpop.f32.mrf.mxu0 }
 0x601   :  { %v399_v56 = vadd.f32 %v704_v51, %v398_v55 }
 0x603   :  { %v402_v58 = vmax.f32 %v399_v56, 0.0 }
 0x605   :  { %v404_v60 = vsel %vm153_vm8, %v402_v58, 0.0  ;;  %v414_v61 = vmul.f32 %v402_v58, %v402_v58 }
 0x606   :  { %v405_v62 = vadd.f32 %v404_v60, %v403_v59 }
 0x607   :  { %v416_v2 = vsel %vm153_vm8, %v414_v61, 0.0 }
 0x608   :  { %v406_v9 = vrot.slane %v405_v62, 4  ;;  %v417_v10 = vadd.f32 %v416_v2, %v415_v63 }
 0x60a   :  { %v407_v11 = vadd.f32 %v406_v9, %v405_v62  ;;  %v418_v12 = vrot.slane %v417_v10, 4 }
 0x60c   :  { %v408_v13 = vrot.slane %v407_v11, 2  ;;  %v419_v14 = vadd.f32 %v418_v12, %v417_v10 }
 0x60e   :  { %v409_v15 = vadd.f32 %v408_v13, %v407_v11  ;;  %v420_v16 = vrot.slane %v419_v14, 2 }
 0x610   :  { %v410_v17 = vrot.slane %v409_v15, 1  ;;  %v421_v18 = vadd.f32 %v420_v16, %v419_v14 }
 0x612   :  { %v411_v19 = vadd.f32 %v410_v17, %v409_v15  ;;  %v422_v22 = vrot.slane %v421_v18, 1 }
 0x614   :  { %v412_v23 = vmul.f32 0.0625, %v411_v19  ;;  %v423_v24 = vadd.f32 %v422_v22, %v421_v18 }
 0x616   :  { %v424_v25 = vmul.f32 0.0625, %v423_v24  ;;  %v425_v26 = vmul.f32 %v412_v23, %v412_v23  ;;  %v439_v38 = vsub.f32 %v401_v54, %v412_v23  ;;  %v440_v39 = vsub.f32 %v402_v58, %v412_v23 }
 0x618   :  { %v426_v27 = vsub.f32 %v424_v25, %v425_v26 }
 0x61a   :  { %v427_v28 = vadd.f32 1e-05, %v426_v27 }
 0x61c   :  { %710 = vrsqrt.f32 %v427_v28  ;;  %vm434_vm0 = vweird.f32 %v427_v28 }
 0x622   :  { %v711_v29 = vpop.eup %710 }
 0x623   :  { %v429_v30 = vmul.f32 %v711_v29, %v427_v28  ;;  %vm435_vm15 = vweird.f32 %v711_v29 }
 0x624   :  { %vm436_vm1 = vmor %vm434_vm0, %vm435_vm15 }
 0x625   :  { %v430_v31 = vmul.f32 %v711_v29, %v429_v30 }
 0x627   :  { %v431_v32 = vmul.f32 0.5, %v430_v31 }
 0x629   :  { %v432_v33 = vsub.f32 1.5, %v431_v32 }
 0x62b   :  { %v433_v35 = vmul.f32 %v711_v29, %v432_v33 }
 0x62d   :  { %v437_v36 = vsel %vm436_vm1, %v711_v29, %v433_v35 }
 0x62e   :  { %v438_v37 = vmul.f32 %v437_v36, %v29_v34 }
 0x630   :  { %v441_v40 = vperm.slane %v438_v37, 0 }
 0x632   :  { %v442_v42 = vmul.f32 %v441_v40, %v439_v38  ;;  %v443_v43 = vmul.f32 %v441_v40, %v440_v39 }
 0x634   :  { %v445_v44 = vadd.f32 %v705_v41, %v442_v42  ;;  %v446_v45 = vadd.f32 %v705_v41, %v443_v43 }
 0x635 LB: > { %v760_v47 = vmov 78   ;;  %s454_s11 = scvt.s32.f32 %s757_s10  ;;  %v761_v49 = vmov 0   ;;  %v479_v62 = vstv %s757_s10  ;;  %s452_s10 = sadd.s32 1, %s757_s10   ;;  %s757_s10 = sphi %s1001_s10, %s452_s10   ;;  %v753_v46 = vphi %v751_v46, %v752_v46  }
 0x636   : > { %712 = vset.pattern.permute.xlu0 %v760_v47  ;;  %vm480_vm6 = vcmp.eq.s32.totalorder %v825_v8, %v479_v62  ;;  %p449_p0 = scmp.ge.s32.totalorder %s452_s10, 2  }
 0x637   : > { %v455_v48 = vstv %s454_s11  ;;  %v513_v11 = vld [vmem:[%s1080_s2 + $0x130] sm:$0xff] (%p449_p0)  ;;  %vm522_vm7 = vcmask (%p449_p0), 1043456   ;;  %v511_v13 = vld [vmem:[%s1080_s2 + $0x120] sm:$0xff] (%p449_p0)  ;;  %v512_v14 = vld [vmem:[%s1080_s2 + $0x128] sm:$0xff] (%p449_p0)  ;;  %vm518_vm9 = vcmask (%p449_p0), 326656   ;;  %v540_v29 = vperm.slane (%p449_p0), %v798_v1, 0 }
 0x638   : > { %vm456_vm2 = vcmp.eq.f32.partialorder %v839_v20, %v455_v48  ;;  %vm457_vm3 = vcmp.eq.f32.partialorder %v844_v21, %v455_v48  ;;  %v517_v12 = vpack.c.bf16 (%p449_p0), %v513_v11, %v513_v11  ;;  %v484_v15 = vld [vmem:[%s1080_s2 + $0x100] sm:$0xff] (%p449_p0)  ;;  %v485_v8 = vld [vmem:[%s1080_s2 + $0x108] sm:$0xff] (%p449_p0)  ;;  %v482_v16 = vld [vmem:[%s1080_s2 + $0xf0] sm:$0xff] (%p449_p0)  ;;  %v516_v18 = vpack.c.bf16 (%p449_p0), %v512_v14, %v511_v13  ;;  %s637_s8 = sshll.u32 (%p449_p0), %s1082_s4, 4  ;;  %s763_s9 = smov (%p449_p0), 128   ;;  %s638_s8 = int_to_ptr.hbm [resolvable:$true] %s637_s8 }
 0x639   : > { %v458_v50 = vsel %vm456_vm2, 1, %v761_v49  ;;  %v459_v51 = vsel %vm457_vm3, 1, %v761_v49  ;;  %v488_v21 = vpack.c.bf16 (%p449_p0), %v485_v8, %v484_v15  ;;  %v483_v17 = vld [vmem:[%s1080_s2 + $0xf8] sm:$0xff] (%p449_p0)  ;;  %v509_v19 = vld [vmem:[%s1080_s2 + $0x110] sm:$0xff] (%p449_p0)  ;;  %v507_v25 = vld [vmem:[%s1081_s3] sm:$0xff] (%p449_p0)  ;;  %v579_v35 = vperm.slane (%p449_p0), %v813_v5, 0 }
 0x63a   : > { %461 = vperm.xlu0 %712, %v458_v50   ;;  %v524_v20 = vsel (%p449_p0), %vm522_vm7, %v517_v12, 0  ;;  %v510_v22 = vld [vmem:[%s1080_s2 + $0x118] sm:$0xff] (%p449_p0)  ;;  %v487_v23 = vpack.c.bf16 (%p449_p0), %v483_v17, %v482_v16  ;;  %v508_v26 = vld [vmem:[%s1081_s3 + $0x8] sm:$0xff] (%p449_p0)  ;;  %vm629_vm0 = vcmask (%p449_p0), 254976   ;;  %s762_s2 = smov (%p449_p0), [#allocation2]   ;;  %vm624_vm1 = vcmask (%p449_p0), 1041408  }
 0x63b   :  { %531 = vmatpush.bf16.msra.mxu1 (%p449_p0), %v524_v20  ;;  %499 = vmatpush.bf16.msra.mxu3 (%p449_p0), %v488_v21  ;;  %v515_v24 = vpack.c.bf16 (%p449_p0), %v510_v22, %v509_v19  ;;  %v514_v28 = vpack.c.bf16 (%p449_p0), %v508_v26, %v507_v25  ;;  %s635_s3 = sshll.u32 (%p449_p0), %s762_s2, 4  ;;  %s764_s10 = smov (%p449_p0), 8   ;;  %s636_s3 = int_to_ptr.vmem [resolvable:$true] %s635_s3 }
 0x63f   :  { %532 = vmatpush.bf16.msra.mxu1 (%p449_p0), %v516_v18  ;;  %500 = vmatpush.bf16.msra.mxu3 (%p449_p0), %v487_v23 }
 0x642   : > { %464 = vperm.xlu0 %712, %v459_v51  }
 0x643   :  { %533 = vmatpush.bf16.msra.mxu1 (%p449_p0), %v515_v24 }
 0x646   :  { %672 = vmatmul.msk.bf16.vlgmr.msra.gmra.mxu1 (%p449_p0), %vm518_vm9, %v514_v28 }
 0x6ac   : > { %v462_v52 = vpop.permute.xlu0 %461 }
 0x6ad   : > { %vm466_vm4 = vcmp.eq.s32.totalorder %v462_v52, 1 }
 0x6ae   : > { %v468_v53 = vsel %vm466_vm4, %v445_v44, -1e+30 }
 0x6af   : > { %v470_v56 = vsel %vm153_vm8, %v468_v53, -inf }
 0x6b4   : > { %v465_v54 = vpop.permute.xlu0 %464 }
 0x6b5   : > { %vm467_vm5 = vcmp.eq.s32.totalorder %v465_v54, 1 }
 0x6b6   : > { %v469_v55 = vsel %vm467_vm5, %v446_v45, -1e+30 }
 0x6b7   : > { %v471_v57 = vsel %vm153_vm8, %v469_v55, -inf }
 0x6b8   : > { %v472_v58 = vmax.f32 %v470_v56, %v471_v57 }
 0x6ba   : > { %v473_v59 = vrot.slane %v472_v58, 4 }
 0x6bc   : > { %v474_v60 = vmax.f32 %v472_v58, %v473_v59 }
 0x6be   : > { %v475_v61 = vrot.slane %v474_v60, 2 }
 0x6c0   : > { %v476_v63 = vmax.f32 %v474_v60, %v475_v61 }
 0x6c2   : > { %v477_v2 = vrot.slane %v476_v63, 1 }
 0x6c3   :  { %451 = sbr.rel (!%p449_p0) target bundleno = 1589 (0x635), region = 43  ;;  %v535_v30 = vpop.f32.mrf.mxu1 (%p449_p0) }
 0x6c4   : > { %v478_v9 = vmax.f32 %v476_v63, %v477_v2  ;;  %v541_v31 = vadd.f32 (%p449_p0), %v540_v29, %v535_v30 }
 0x6c6   : > { %v481_v10 = vsel %vm480_vm6, %v478_v9, %v753_v46   ;;  %v1051_v32 = vmax.f32 (%p449_p0), %v541_v31, 0.0 }
 0x6c7   : > { %v752_v46 = vmov %v481_v10   ;;  %v486_v27 = vpack.c.bf16 (%p449_p0), %v481_v10, %v481_v10 }
 0x6c8   :  { %v543_v33 = vsel %vm153_vm8, %v1051_v32, 0.0  ;;  %v551_v34 = vmul.f32 %v1051_v32, %v1051_v32 }
 0x6c9   :  { %671 = vmatmul.msk.bf16.vlgmr.msra.gmra.mxu3 %vm153_vm8, %v486_v27  ;;  %v544_v36 = vrot.slane %v543_v33, 4 }
 0x6ca   :  { %v552_v37 = vsel %vm153_vm8, %v551_v34, 0.0  ;;  %v577_v34 = vperm.slane %v808_v4, 0  ;;  %v616_v4 = vperm.slane %v823_v7, 0 }
 0x6cb   :  { %v545_v38 = vadd.f32 %v544_v36, %v543_v33  ;;  %v553_v39 = vrot.slane %v552_v37, 4  ;;  %v537_v40 = vpop.f32.mrf.mxu1 }
 0x6cc   :  { %v580_v41 = vadd.f32 %v579_v35, %v537_v40  ;;  %v489_v40 = vperm.slane %v793_v0, 0 }
 0x6cd   :  { %v546_v1 = vrot.slane %v545_v38, 2  ;;  %v554_v42 = vadd.f32 %v553_v39, %v552_v37 }
 0x6ce   :  { %v1059_v43 = vmax.f32 %v580_v41, 0.0 }
 0x6cf   :  { %v547_v44 = vadd.f32 %v546_v1, %v545_v38  ;;  %v555_v45 = vrot.slane %v554_v42, 2 }
 0x6d0   :  { %v582_v46 = vsel %vm153_vm8, %v1059_v43, 0.0  ;;  %v590_v47 = vmul.f32 %v1059_v43, %v1059_v43 }
 0x6d1   :  { %v548_v5 = vrot.slane %v547_v44, 1  ;;  %v556_v48 = vadd.f32 %v555_v45, %v554_v42  ;;  %v583_v49 = vrot.slane %v582_v46, 4 }
 0x6d2   :  { %v591_v50 = vsel %vm153_vm8, %v590_v47, 0.0 }
 0x6d3   :  { %v549_v51 = vadd.f32 %v548_v5, %v547_v44  ;;  %v557_v52 = vrot.slane %v556_v48, 1  ;;  %v584_v53 = vadd.f32 %v583_v49, %v582_v46  ;;  %v592_v54 = vrot.slane %v591_v50, 4 }
 0x6d5   :  { %v550_v56 = vmul.f32 0.125, %v549_v51  ;;  %v558_v57 = vadd.f32 %v557_v52, %v556_v48  ;;  %v585_v58 = vrot.slane %v584_v53, 2  ;;  %v593_v59 = vadd.f32 %v592_v54, %v591_v50 }
 0x6d7   :  { %v559_v60 = vmul.f32 0.125, %v558_v57  ;;  %v560_v61 = vmul.f32 %v550_v56, %v550_v56  ;;  %v586_v62 = vadd.f32 %v585_v58, %v584_v53  ;;  %v594_v63 = vrot.slane %v593_v59, 2 }
 0x6d8   :  { %v574_v31 = vsub.f32 %v1051_v32, %v550_v56 }
 0x6d9   :  { %v561_v2 = vsub.f32 %v559_v60, %v560_v61  ;;  %v587_v9 = vrot.slane %v586_v62, 1  ;;  %v595_v10 = vadd.f32 %v594_v63, %v593_v59 }
 0x6db   :  { %v562_v11 = vadd.f32 1e-05, %v561_v2  ;;  %v588_v12 = vadd.f32 %v587_v9, %v586_v62  ;;  %v596_v13 = vrot.slane %v595_v10, 1 }
 0x6dd   :  { %713 = vrsqrt.f32 %v562_v11  ;;  %v589_v15 = vmul.f32 0.125, %v588_v12  ;;  %v597_v8 = vadd.f32 %v596_v13, %v595_v10  ;;  %vm569_vm11 = vweird.f32 %v562_v11 }
 0x6df   :  { %v599_v20 = vmul.f32 %v589_v15, %v589_v15  ;;  %v598_v21 = vmul.f32 0.125, %v597_v8  ;;  %v613_v32 = vsub.f32 %v1059_v43, %v589_v15 }
 0x6e1   :  { %v600_v16 = vsub.f32 %v598_v21, %v599_v20 }
 0x6e3   :  { %v714_v17 = vpop.eup %713  ;;  %v601_v19 = vadd.f32 1e-05, %v600_v16 }
 0x6e4   :  { %v564_v18 = vmul.f32 %v714_v17, %v562_v11  ;;  %vm570_vm10 = vweird.f32 %v714_v17 }
 0x6e5   :  { %715 = vrsqrt.f32 %v601_v19  ;;  %vm571_vm12 = vmor %vm569_vm11, %vm570_vm10  ;;  %vm608_vm14 = vweird.f32 %v601_v19 }
 0x6e6   :  { %v565_v22 = vmul.f32 %v714_v17, %v564_v18 }
 0x6e8   :  { %v566_v23 = vmul.f32 0.5, %v565_v22 }
 0x6ea   :  { %v567_v24 = vsub.f32 1.5, %v566_v23 }
 0x6eb   :  { %v716_v25 = vpop.eup %715 }
 0x6ec   :  { %v568_v26 = vmul.f32 %v714_v17, %v567_v24  ;;  %v603_v27 = vmul.f32 %v716_v25, %v601_v19  ;;  %vm609_vm13 = vweird.f32 %v716_v25 }
 0x6ed   :  { %vm610_vm15 = vmor %vm608_vm14, %vm609_vm13 }
 0x6ee   :  { %v572_v28 = vsel %vm571_vm12, %v714_v17, %v568_v26  ;;  %v604_v30 = vmul.f32 %v716_v25, %v603_v27 }
 0x6ef   :  { %v573_v29 = vmul.f32 %v572_v28, %v803_v3 }
 0x6f0   :  { %v605_v35 = vmul.f32 0.5, %v604_v30 }
 0x6f1   :  { %v575_v33 = vperm.slane %v573_v29, 0 }
 0x6f2   :  { %v606_v37 = vsub.f32 1.5, %v605_v35 }
 0x6f3   :  { %v576_v36 = vmul.f32 %v575_v33, %v574_v31 }
 0x6f4   :  { %v607_v39 = vmul.f32 %v716_v25, %v606_v37 }
 0x6f5   :  { %v578_v38 = vadd.f32 %v577_v34, %v576_v36 }
 0x6f6   :  { %v611_v1 = vsel %vm610_vm15, %v716_v25, %v607_v39 }
 0x6f7   :  { %v622_v41 = vrot.slane %v578_v38, 6  ;;  %v612_v3 = vmul.f32 %v611_v1, %v818_v6 }
 0x6f9   :  { %630 = vst.msk [vmem:[#allocation2 + $0x10] sm:$0x3] %vm629_vm0, %v622_v41  ;;  %v614_v42 = vperm.slane %v612_v3, 0 }
 0x6fb   :  { %v615_v45 = vmul.f32 %v614_v42, %v613_v32 }
 0x6fd   :  { %v617_v46 = vadd.f32 %v616_v4, %v615_v45 }
 0x6ff   :  { %v619_v0 = vrot.slane %v617_v46, 6 }
 0x701   :  { %v626_v5 = vsel %vm624_vm1, %v619_v0, %v622_v41 }
 0x702   :  { %628 = vst.msk [vmem:[#allocation2 + $0x8] sm:$0xff] %vm153_vm8, %v626_v5 }
 0x74c   :  { %v502_v55 = vpop.f32.mrf.mxu3 }
 0x74d   :  { %v503_v44 = vadd.f32 %v502_v55, %v489_v40 }
 0x74f   :  { %v506_v47 = vmax.f32 %v503_v44, 0.0 }
 0x751   :  { %v625_v6 = vsel %vm624_vm1, %v506_v47, %v619_v0 }
 0x752   :  { %627 = vst.msk [vmem:[#allocation2] sm:$0xff] %vm153_vm8, %v625_v6 }
 0x753   :  { %643 = dma.vmem_to_hbm [thread:$0]  %s636_s3, 384, %s638_s8, [#allocation3], %s763_s9, %s763_s9, %s764_s10  }
 0x754   :  { %v504_v14 = vpop.f32.mrf.mxu3 }
 0x755   :  { %749 = dma.done.wait [#allocation3], 384  }
 0x756   :  { %750 = vsyncadd [#allocation3], 4294966912 }
 0x757   :  { %648 = vsyncpa [#allocation3], 1 }

</bundles_post_ra>
